<compile_context>
chip_gen: v7x
topology: tpu7x:2x2x1
jax: 0.10.0
libtpu: 0.0.40
codegen_flags: <defaults>
</compile_context>

<pallas_src>
import functools

import jax
import jax.numpy as jnp
from jax.experimental import pallas as pl
from jax.experimental.pallas import tpu as pltpu


def _round_up(n, m):
    return ((n + m - 1) // m) * m


def _mlp_kernel(x_ref, w1_ref, t1_ref, w2_ref, t2_ref, w3_ref, b3_ref, o_ref):
    # fc1 (+ folded bn1) + relu   -- bf16 MXU operands, f32 accumulate
    h1 = jnp.dot(x_ref[...], w1_ref[...], preferred_element_type=jnp.float32)
    h1 = jnp.maximum(h1 + t1_ref[...], 0.0)

    # dropout(p=0.5) is identity in eval mode
    # TODO(synk): training-mode dropout (pltpu.prng_random_bits mask) not emitted.

    # fc2 (+ folded bn2) + relu
    h2 = jnp.dot(h1.astype(w2_ref.dtype), w2_ref[...],
                 preferred_element_type=jnp.float32)
    h2 = jnp.maximum(h2 + t2_ref[...], 0.0)

    # fc3 (output columns padded to a lane-dense 128; padding cols are zero)
    out = jnp.dot(h2.astype(w3_ref.dtype), w3_ref[...],
                  preferred_element_type=jnp.float32)
    o_ref[...] = (out + b3_ref[...]).astype(o_ref.dtype)


@functools.partial(jax.jit, static_argnames=("num_classes", "tile_b"))
def improved_nn_forward(x, params, *, num_classes, tile_b=128):
    """x: (B, input_size) float32. params: dict from make_params().
    num_classes must be a static Python int (it controls the output slice)."""
    B, D = x.shape
    H1 = params["w1t"].shape[1]
    H2 = params["w2t"].shape[1]
    Cp = params["w3t"].shape[1]            # padded (lane-dense) class dim

    # Batch tiling: multiple of 8 sublanes; pad the batch so it divides evenly.
    tb = _round_up(min(tile_b, _round_up(B, 8)), 8)
    Bp = _round_up(B, tb)
    if Bp != B:
        x = jnp.pad(x, ((0, Bp - B), (0, 0)))
    x = x.astype(params["w1t"].dtype)      # bf16 MXU operand

    grid = (Bp // tb,)

    def full(shape):
        return pl.BlockSpec(shape, lambda i: (0,) * len(shape))

    itemsize = lambda a: a.size * a.dtype.itemsize
    flops = 2 * Bp * (D * H1 + H1 * H2 + H2 * Cp)
    bytes_accessed = (
        itemsize(x)
        + itemsize(params["w1t"]) + itemsize(params["shift1"])
        + itemsize(params["w2t"]) + itemsize(params["shift2"])
        + itemsize(params["w3t"]) + itemsize(params["b3"])
        + Bp * Cp * 4)

    out = pl.pallas_call(
        _mlp_kernel,
        out_shape=jax.ShapeDtypeStruct((Bp, Cp), jnp.float32),
        grid_spec=pltpu.PrefetchScalarGridSpec(
            num_scalar_prefetch=0,
            grid=grid,
            in_specs=[
                pl.BlockSpec((tb, D), lambda i: (i, 0)),   # x tile (pipelined)
                full((D, H1)),                             # w1t (scale folded)
                full((1, H1)),                             # shift1 (f32)
                full((H1, H2)),                            # w2t (scale folded)
                full((1, H2)),                             # shift2 (f32)
                full((H2, Cp)),                            # w3t (padded cols)
                full((1, Cp)),                             # b3  (padded cols)
            ],
            out_specs=pl.BlockSpec((tb, Cp), lambda i: (i, 0)),
        ),
        compiler_params=pltpu.CompilerParams(
            dimension_semantics=("parallel",)),
        cost_estimate=pl.CostEstimate(
            flops=flops, transcendentals=0, bytes_accessed=bytes_accessed),
    )(x, params["w1t"], params["shift1"],
      params["w2t"], params["shift2"],
      params["w3t"], params["b3"])

    # Static slices: B, num_classes are Python ints here.
    return out[:B, :num_classes]


def make_params(key, input_size, num_classes, eps=1e-5,
                compute_dtype=jnp.bfloat16):
    """Deterministic synthetic parameters. BN running stats + linear biases are
    folded: the per-feature BN scale is baked into the weight columns, the
    remaining affine term becomes a single per-feature shift. w3t/b3 are padded
    to a lane-dense 128-column output. (No python scalars in the dict — keeps
    everything jit-traceable without dynamic slicing.)"""
    ks = jax.random.split(key, 12)

    def linear(kw, kb, fan_in, fan_out):
        bound = 1.0 / jnp.sqrt(fan_in)
        w = jax.random.uniform(kw, (fan_out, fan_in), jnp.float32, -bound, bound)
        b = jax.random.uniform(kb, (fan_out,), jnp.float32, -bound, bound)
        return w, b

    w1, b1 = linear(ks[0], ks[1], input_size, 256)
    w2, b2 = linear(ks[2], ks[3], 256, 128)
    w3, b3 = linear(ks[4], ks[5], 128, num_classes)

    def bn(kg, kb, km, kv, n):
        gamma = 1.0 + 0.1 * jax.random.normal(kg, (n,), jnp.float32)
        beta = 0.1 * jax.random.normal(kb, (n,), jnp.float32)
        mean = 0.1 * jax.random.normal(km, (n,), jnp.float32)
        var = jnp.abs(1.0 + 0.1 * jax.random.normal(kv, (n,), jnp.float32))
        return gamma, beta, mean, var

    g1, be1, m1, v1 = bn(ks[6], ks[7], ks[8], ks[9], 256)
    g2, be2, m2, v2 = bn(ks[10], ks[11], ks[6], ks[7], 128)

    # bn(x @ Wt + b) = (x @ Wt) * scale + shift  ==  x @ (Wt * scale) + shift
    scale1 = g1 / jnp.sqrt(v1 + eps)
    shift1 = (b1 - m1) * scale1 + be1
    scale2 = g2 / jnp.sqrt(v2 + eps)
    shift2 = (b2 - m2) * scale2 + be2

    w1t = (w1.T * scale1[None, :])
    w2t = (w2.T * scale2[None, :])

    # Lane-dense output: pad class dim to a multiple of 128 with zero columns.
    Cp = _round_up(num_classes, 128)
    w3t_p = jnp.zeros((128, Cp), jnp.float32).at[:, :num_classes].set(w3.T)
    b3_p = jnp.zeros((Cp,), jnp.float32).at[:num_classes].set(b3)

    return {
        "w1t": w1t.astype(compute_dtype), "shift1": shift1[None, :],
        "w2t": w2t.astype(compute_dtype), "shift2": shift2[None, :],
        "w3t": w3t_p.astype(compute_dtype), "b3": b3_p[None, :],
    }


def reference_forward(x, params, num_classes):
    """Pure-JAX reference mirroring the kernel's casts (bf16 MXU operands,
    f32 accumulate / elementwise)."""
    cd = params["w1t"].dtype
    f32 = jnp.float32
    xq = x.astype(cd).astype(f32)
    h1 = jnp.maximum(xq @ params["w1t"].astype(f32) + params["shift1"], 0.0)
    h1q = h1.astype(cd).astype(f32)
    h2 = jnp.maximum(h1q @ params["w2t"].astype(f32) + params["shift2"], 0.0)
    h2q = h2.astype(cd).astype(f32)
    out = h2q @ params["w3t"].astype(f32) + params["b3"]
    return out[:, :num_classes]


if __name__ == "__main__":
    key = jax.random.PRNGKey(0)
    k_x, k_p = jax.random.split(key)

    batch, input_size, num_classes = 512, 32, 16
    x = jax.random.normal(k_x, (batch, input_size), jnp.float32)
    params = make_params(k_p, input_size, num_classes)

    out = improved_nn_forward(x, params, num_classes=num_classes, tile_b=128)
    out = jax.block_until_ready(out)            # grid = (4,) -> pipelined

    ref = reference_forward(x, params, num_classes)
    assert out.shape == (batch, num_classes)
    assert jnp.allclose(out, ref, atol=1e-2, rtol=1e-2)

    print("KERNEL_OK")
</pallas_src>

<mosaic_0001>
module attributes {stable_mosaic.version = 11 : i64} {
  func.func @_mlp_kernel(%arg0: i32, %arg1: memref<128x32xbf16, #tpu.memory_space<vmem>>, %arg2: memref<32x256xbf16, #tpu.memory_space<vmem>>, %arg3: memref<1x256xf32, #tpu.memory_space<vmem>>, %arg4: memref<256x128xbf16, #tpu.memory_space<vmem>>, %arg5: memref<1x128xf32, #tpu.memory_space<vmem>>, %arg6: memref<128x128xbf16, #tpu.memory_space<vmem>>, %arg7: memref<1x128xf32, #tpu.memory_space<vmem>>, %arg8: memref<128x128xf32, #tpu.memory_space<vmem>>) attributes {dimension_semantics = [#tpu.dimension_semantics<parallel>], iteration_bounds = array<i64: 4>, scalar_prefetch = 0 : i64, scratch_operands = 0 : i64, tpu.core_type = #tpu.core_type<tc>, window_params = [{transform_indices = @transform_0, window_bounds = array<i64: 128, 32>}, {pipeline_mode = #tpu.pipeline_mode<synchronous>, transform_indices = @transform_1, window_bounds = array<i64: 32, 256>}, {pipeline_mode = #tpu.pipeline_mode<synchronous>, transform_indices = @transform_2, window_bounds = array<i64: 1, 256>}, {pipeline_mode = #tpu.pipeline_mode<synchronous>, transform_indices = @transform_3, window_bounds = array<i64: 256, 128>}, {pipeline_mode = #tpu.pipeline_mode<synchronous>, transform_indices = @transform_4, window_bounds = array<i64: 1, 128>}, {pipeline_mode = #tpu.pipeline_mode<synchronous>, transform_indices = @transform_5, window_bounds = array<i64: 128, 128>}, {pipeline_mode = #tpu.pipeline_mode<synchronous>, transform_indices = @transform_6, window_bounds = array<i64: 1, 128>}, {transform_indices = @transform_7, window_bounds = array<i64: 128, 128>}]} {
    %c0 = arith.constant 0 : index
    %c0_0 = arith.constant 0 : index
    %0 = vector.load %arg1[%c0, %c0_0] : memref<128x32xbf16, #tpu.memory_space<vmem>>, vector<128x32xbf16>
    %c0_1 = arith.constant 0 : index
    %c0_2 = arith.constant 0 : index
    %1 = vector.load %arg2[%c0_1, %c0_2] : memref<32x256xbf16, #tpu.memory_space<vmem>>, vector<32x256xbf16>
    %cst = arith.constant dense<0.000000e+00> : vector<128x256xf32>
    %2 = tpu.matmul %0, %1, %cst {dimension_numbers = #tpu.dot_dimension_numbers<[1], [0], [0], [1], [0, 0, 1, 1], [], []>} : vector<128x32xbf16>, vector<32x256xbf16>, vector<128x256xf32> -> vector<128x256xf32>
    %c0_3 = arith.constant 0 : index
    %c0_4 = arith.constant 0 : index
    %3 = vector.load %arg3[%c0_3, %c0_4] : memref<1x256xf32, #tpu.memory_space<vmem>>, vector<1x256xf32>
    %4 = vector.broadcast %3 : vector<1x256xf32> to vector<128x256xf32>
    %5 = arith.addf %2, %4 : vector<128x256xf32>
    %cst_5 = arith.constant 0.000000e+00 : f32
    %6 = vector.broadcast %cst_5 : f32 to vector<128x256xf32>
    %7 = arith.maximumf %5, %6 : vector<128x256xf32>
    %8 = arith.truncf %7 : vector<128x256xf32> to vector<128x256xbf16>
    %c0_6 = arith.constant 0 : index
    %c0_7 = arith.constant 0 : index
    %9 = vector.load %arg4[%c0_6, %c0_7] : memref<256x128xbf16, #tpu.memory_space<vmem>>, vector<256x128xbf16>
    %cst_8 = arith.constant dense<0.000000e+00> : vector<128x128xf32>
    %10 = tpu.matmul %8, %9, %cst_8 {dimension_numbers = #tpu.dot_dimension_numbers<[1], [0], [0], [1], [0, 0, 1, 1], [], []>} : vector<128x256xbf16>, vector<256x128xbf16>, vector<128x128xf32> -> vector<128x128xf32>
    %c0_9 = arith.constant 0 : index
    %c0_10 = arith.constant 0 : index
    %11 = vector.load %arg5[%c0_9, %c0_10] : memref<1x128xf32, #tpu.memory_space<vmem>>, vector<1x128xf32>
    %12 = vector.broadcast %11 : vector<1x128xf32> to vector<128x128xf32>
    %13 = arith.addf %10, %12 : vector<128x128xf32>
    %cst_11 = arith.constant 0.000000e+00 : f32
    %14 = vector.broadcast %cst_11 : f32 to vector<128x128xf32>
    %15 = arith.maximumf %13, %14 : vector<128x128xf32>
    %16 = arith.truncf %15 : vector<128x128xf32> to vector<128x128xbf16>
    %c0_12 = arith.constant 0 : index
    %c0_13 = arith.constant 0 : index
    %17 = vector.load %arg6[%c0_12, %c0_13] : memref<128x128xbf16, #tpu.memory_space<vmem>>, vector<128x128xbf16>
    %cst_14 = arith.constant dense<0.000000e+00> : vector<128x128xf32>
    %18 = tpu.matmul %16, %17, %cst_14 {dimension_numbers = #tpu.dot_dimension_numbers<[1], [0], [0], [1], [0, 0, 1, 1], [], []>} : vector<128x128xbf16>, vector<128x128xbf16>, vector<128x128xf32> -> vector<128x128xf32>
    %c0_15 = arith.constant 0 : index
    %c0_16 = arith.constant 0 : index
    %19 = vector.load %arg7[%c0_15, %c0_16] : memref<1x128xf32, #tpu.memory_space<vmem>>, vector<1x128xf32>
    %20 = vector.broadcast %19 : vector<1x128xf32> to vector<128x128xf32>
    %21 = arith.addf %18, %20 : vector<128x128xf32>
    %c0_17 = arith.constant 0 : index
    %c0_18 = arith.constant 0 : index
    %22 = vector.load %arg8[%c0_17, %c0_18] : memref<128x128xf32, #tpu.memory_space<vmem>>, vector<128x128xf32>
    tpu.vector_store %arg8[%c0_17, %c0_18], %21 {strides = array<i32>} : memref<128x128xf32, #tpu.memory_space<vmem>>, vector<128x128xf32>,
    return
  }
  func.func @transform_0(%arg0: i32) -> (i32, i32) {
    %c0_i32 = arith.constant 0 : i32
    %c0_i32_0 = arith.constant 0 : i32
    return %arg0, %c0_i32 : i32, i32
  }
  func.func @transform_1(%arg0: i32) -> (i32, i32) {
    %c0_i32 = arith.constant 0 : i32
    %c0_i32_0 = arith.constant 0 : i32
    %c0_i32_1 = arith.constant 0 : i32
    return %c0_i32, %c0_i32_0 : i32, i32
  }
  func.func @transform_2(%arg0: i32) -> (i32, i32) {
    %c0_i32 = arith.constant 0 : i32
    %c0_i32_0 = arith.constant 0 : i32
    %c0_i32_1 = arith.constant 0 : i32
    return %c0_i32, %c0_i32_0 : i32, i32
  }
  func.func @transform_3(%arg0: i32) -> (i32, i32) {
    %c0_i32 = arith.constant 0 : i32
    %c0_i32_0 = arith.constant 0 : i32
    %c0_i32_1 = arith.constant 0 : i32
    return %c0_i32, %c0_i32_0 : i32, i32
  }
  func.func @transform_4(%arg0: i32) -> (i32, i32) {
    %c0_i32 = arith.constant 0 : i32
    %c0_i32_0 = arith.constant 0 : i32
    %c0_i32_1 = arith.constant 0 : i32
    return %c0_i32, %c0_i32_0 : i32, i32
  }
  func.func @transform_5(%arg0: i32) -> (i32, i32) {
    %c0_i32 = arith.constant 0 : i32
    %c0_i32_0 = arith.constant 0 : i32
    %c0_i32_1 = arith.constant 0 : i32
    return %c0_i32, %c0_i32_0 : i32, i32
  }
  func.func @transform_6(%arg0: i32) -> (i32, i32) {
    %c0_i32 = arith.constant 0 : i32
    %c0_i32_0 = arith.constant 0 : i32
    %c0_i32_1 = arith.constant 0 : i32
    return %c0_i32, %c0_i32_0 : i32, i32
  }
  func.func @transform_7(%arg0: i32) -> (i32, i32) {
    %c0_i32 = arith.constant 0 : i32
    %c0_i32_0 = arith.constant 0 : i32
    return %arg0, %c0_i32 : i32, i32
  }
}

</mosaic_0001>

<bundles_post_ra>
// kernel: improved_nn_forward.1
= control target key start
LH: loop header
LB: loop body
LE: loop exit
PB: predicated region body
PF: predicated region fallthrough
CT: control target
= control target key end

     0   :  { %s1322_s24 = smov 0   ;;  %s1526_s0 = inlined_call_operand.vmem [shape: bf16[512,32], index: 0, kind: input, shape index: {}]   ;;  %s1527_s1 = inlined_call_operand.vmem [shape: bf16[32,256], index: 1, kind: input, shape index: {}]   ;;  %s1528_s2 = inlined_call_operand.vmem [shape: f32[1,256], index: 2, kind: input, shape index: {}]   ;;  %s1529_s3 = inlined_call_operand.vmem [shape: bf16[256,128], index: 3, kind: input, shape index: {}]   ;;  %s1530_s4 = inlined_call_operand.vmem [shape: f32[1,128], index: 4, kind: input, shape index: {}]   ;;  %s1531_s5 = inlined_call_operand.vmem [shape: bf16[128,128], index: 5, kind: input, shape index: {}]   ;;  %s1532_s6 = inlined_call_operand.vmem [shape: f32[1,128], index: 6, kind: input, shape index: {}]   ;;  %s1533_s7 = inlined_call_operand.vmem [shape: f32[512,128], index: 7, kind: output, shape index: {}]  }
   0x1 LB: > { %s1057_s25 = sadd.s32 4294967295, %s1279_s24   ;;  %p1061_p0 = scmp.ge.s32.totalorder %s1279_s24, 1  ;;  %s1279_s24 = sphi %s1322_s24, %s17_s24  }
   0x2   : > { %p238_p1 = scmp.lt.s32.totalorder %s1279_s24, 5 }
   0x4   : > { %p239_p2 = pnand %p1061_p0, %p238_p1 }
   0x5   : > { %v1235_v0 = vld [vmem:[%s1527_s1 + $0x4] ss:$8 sps:$4 sm:$0xff] (!%p239_p2)   ;;  %s1062_s28 = sshll.u32 (!%p239_p2), %s1057_s25, 4  ;;  %v1237_v1 = vld [vmem:[%s1527_s1] ss:$8 sps:$4 sm:$0xff] (!%p239_p2)   ;;  %v1281_v2 = vmov (!%p239_p2), 0   ;;  %v305_v32 = vlaneseq (!%p239_p2) }
   0x6   : > { %242 = sbr.rel (%p239_p2) target bundleno = 736 (0x2e0), region = 48  ;;  %432 = vmatprep.mubr.bf16.mxu0 (!%p239_p2), %v1281_v2  ;;  %p271_p3 = scmp.lt.s32.totalorder (!%p239_p2), %s1062_s28, 63  ;;  %400 = vmatprep.subr.bf16.mxu0 (!%p239_p2), %v1235_v0  ;;  %v1238_v3 = vld [vmem:[%s1527_s1 + $0x14] ss:$8 sps:$4 sm:$0xff] (!%p239_p2)   ;;  %v1240_v4 = vld [vmem:[%s1527_s1 + $0x10] ss:$8 sps:$4 sm:$0xff] (!%p239_p2)  }
   0x7   : > { %401 = vmatpush1.bf16.msra.mxu0 (!%p239_p2), %v1237_v1  ;;  %v1249_v5 = vld [vmem:[%s1529_s3 + $0x40] sm:$0xff] (!%p239_p2)   ;;  %v1251_v7 = vld [vmem:[%s1529_s3 + $0x48] sm:$0xff] (!%p239_p2)   ;;  %vm375_vm0 = vcmask (!%p239_p2), 261120   ;;  %v1253_v11 = vld [vmem:[%s1529_s3 + $0x50] sm:$0xff] (!%p239_p2)   ;;  %v306_v33 = vshrl.u32 (!%p239_p2), %v305_v32, 7 }
   0x8   : > { %402 = vmatprep.subr.bf16.mxu0 (!%p239_p2), %v1238_v3  ;;  %v1250_v6 = vld [vmem:[%s1529_s3] sm:$0xff] (!%p239_p2)   ;;  %1114 = vmatprep.subr.bf16.mxu1 (!%p239_p2), %v1249_v5  ;;  %v1252_v8 = vld [vmem:[%s1529_s3 + $0x8] sm:$0xff] (!%p239_p2)   ;;  %v1254_v12 = vld [vmem:[%s1529_s3 + $0x10] sm:$0xff] (!%p239_p2)  }
   0x9   : > { %1115 = vmatpush3.bf16.msra.mxu1 (!%p239_p2), %v1250_v6  ;;  %v1255_v13 = vld [vmem:[%s1529_s3 + $0x58] sm:$0xff] (!%p239_p2)   ;;  %v1257_v15 = vld [vmem:[%s1529_s3 + $0x60] sm:$0xff] (!%p239_p2)   ;;  %v1259_v18 = vld [vmem:[%s1529_s3 + $0x68] sm:$0xff] (!%p239_p2)   ;;  %v307_v34 = vsub.s32 (!%p239_p2), 0, %v306_v33  ;;  %v311_v36 = vsub.s32 (!%p239_p2), 1, %v306_v33 }
   0xa   : > { %1116 = vmatprep.subr.bf16.mxu1 (!%p239_p2), %v1251_v7  ;;  %v1256_v14 = vld [vmem:[%s1529_s3 + $0x18] sm:$0xff] (!%p239_p2)   ;;  %v1258_v17 = vld [vmem:[%s1529_s3 + $0x20] sm:$0xff] (!%p239_p2)   ;;  %v1260_v24 = vld [vmem:[%s1529_s3 + $0x28] sm:$0xff] (!%p239_p2)  }
   0xb   : > { %403 = vmatpush1.bf16.msra.mxu0 (!%p239_p2), %v1240_v4  ;;  %v1261_v25 = vld [vmem:[%s1529_s3 + $0x70] sm:$0xff] (!%p239_p2)   ;;  %v1263_v27 = vld [vmem:[%s1529_s3 + $0x78] sm:$0xff] (!%p239_p2)   ;;  %v1265_v29 = vld [vmem:[%s1531_s5] sm:$0xff] (!%p239_p2)  }
   0xc   : > { %v1262_v26 = vld [vmem:[%s1529_s3 + $0x30] sm:$0xff] (!%p239_p2)   ;;  %v1264_v28 = vld [vmem:[%s1529_s3 + $0x38] sm:$0xff] (!%p239_p2)   ;;  %v1266_v30 = vld [vmem:[%s1531_s5 + $0x8] sm:$0xff] (!%p239_p2)   ;;  %1194 = vmatprep.subr.bf16.mxu0 (!%p239_p2), %v1265_v29 }
   0xd   : > { %s1535_s28 = smov (!%p271_p3, %s1062_s28), 63  ;;  %1117 = vmatpush3.bf16.msra.mxu1 %v1252_v8  ;;  %v1267_v31 = vld [vmem:[%s1531_s5 + $0x10] sm:$0xff]   ;;  %v303_v35 = vld [vmem:[%s1528_s2] sm:$0x3] }
   0xe   : > { %s1063_s16 = sshll.u32 %s1535_s28, 2  ;;  %1118 = vmatprep.subr.bf16.mxu1 %v1253_v11  ;;  %v1426_v37 = vrot.slane %v303_v35, %v307_v34  ;;  %v1428_v38 = vrot.slane %v303_v35, %v311_v36  ;;  %s1065_s27 = sshll.u32 %s1535_s28, 3 }
   0xf   : > { %s1357_s21 = scalar_lea.vmem %s1526_s0, %s1063_s16  ;;  %s1505_s10 = scalar_lea.vmem %s1533_s7, %s1065_s27 }
  0x10   : > { %v1241_v9 = vld [vmem:[%s1357_s21] sm:$0xff]   ;;  %v1242_v10 = vld [vmem:[%s1357_s21 + $0x8] sm:$0xff]   ;;  %v1243_v16 = vld [vmem:[%s1357_s21 + $0x10] sm:$0xff]  }
  0x11   : > { %1078 = vmatmul.mubr.msk.bf16.vlgmr.msra.gmra.mrb[0].mxu0 %vm375_vm0, %v1241_v9  ;;  %1119 = vmatpush3.bf16.msra.mxu1 %v1254_v12  ;;  %v1244_v19 = vld [vmem:[%s1357_s21 + $0x18] sm:$0xff]   ;;  %v1245_v20 = vld [vmem:[%s1357_s21 + $0x20] sm:$0xff]   ;;  %v1246_v21 = vld [vmem:[%s1357_s21 + $0x28] sm:$0xff]  }
  0x12   : > { %442 = vmatprep.mubr.bf16.mxu0 %v1281_v2  ;;  %1120 = vmatprep.subr.bf16.mxu1 %v1255_v13  ;;  %v1247_v22 = vld [vmem:[%s1357_s21 + $0x30] sm:$0xff]   ;;  %v1248_v23 = vld [vmem:[%s1357_s21 + $0x38] sm:$0xff]  }
  0x13   : > { %1195 = vmatpush3.bf16.msra.mxu0 %v1265_v29 }
  0x14   : > { %1196 = vmatprep.subr.bf16.mxu0 %v1266_v30 }
  0x15   : > { %1121 = vmatpush3.bf16.msra.mxu1 %v1256_v14 }
  0x16   : > { %1122 = vmatprep.subr.bf16.mxu1 %v1257_v15 }
  0x17   : > { %1197 = vmatpush3.bf16.msra.mxu0 %v1266_v30 }
  0x18   : > { %1198 = vmatprep.subr.bf16.mxu0 %v1267_v31 }
  0x19   : > { %1079 = vmatmul.mubr.msk.bf16.gmra.mrb[4].mxu0 %vm375_vm0, %v1242_v10  ;;  %1123 = vmatpush3.bf16.msra.mxu1 %v1258_v17 }
  0x1a   : > { %452 = vmatprep.mubr.bf16.mxu0 %v1281_v2  ;;  %1124 = vmatprep.subr.bf16.mxu1 %v1259_v18 }
  0x1b   : > { %1199 = vmatpush3.bf16.msra.mxu0 %v1267_v31 }
  0x1d   : > { %1125 = vmatpush3.bf16.msra.mxu1 %v1260_v24 }
  0x1e   : > { %1126 = vmatprep.subr.bf16.mxu1 %v1261_v25 }
  0x21   : > { %1080 = vmatmul.mubr.msk.bf16.gmra.mrb[8].mxu0 %vm375_vm0, %v1243_v16  ;;  %1127 = vmatpush3.bf16.msra.mxu1 %v1262_v26 }
  0x22   : > { %462 = vmatprep.mubr.bf16.mxu0 %v1281_v2  ;;  %1128 = vmatprep.subr.bf16.mxu1 %v1263_v27 }
  0x25   : > { %1129 = vmatpush3.bf16.msra.mxu1 %v1264_v28 }
  0x29   : > { %1081 = vmatmul.mubr.msk.bf16.gmra.mrb[12].mxu0 %vm375_vm0, %v1244_v19 }
  0x2a   : > { %472 = vmatprep.mubr.bf16.mxu0 %v1281_v2 }
  0x31   : > { %1082 = vmatmul.mubr.msk.bf16.gmra.mrb[16].mxu0 %vm375_vm0, %v1245_v20 }
  0x32   : > { %482 = vmatprep.mubr.bf16.mxu0 %v1281_v2 }
  0x39   : > { %1083 = vmatmul.mubr.msk.bf16.gmra.mrb[20].mxu0 %vm375_vm0, %v1246_v21 }
  0x3a   : > { %492 = vmatprep.mubr.bf16.mxu0 %v1281_v2 }
  0x41   : > { %1084 = vmatmul.mubr.msk.bf16.gmra.mrb[24].mxu0 %vm375_vm0, %v1247_v22 }
  0x42   : > { %502 = vmatprep.mubr.bf16.mxu0 %v1281_v2 }
  0x49   : > { %1085 = vmatmul.mubr.msk.bf16.gmra.mrb[28].mxu0 %vm375_vm0, %v1248_v23 }
  0xe4   : > { %v434_v39 = vpop.f32.mrb[0].mxu0 }
  0xe5   : > { %v435_v40 = vadd.f32 %v434_v39, %v1426_v37  ;;  %v436_v41 = vpop.f32.mrb[1].mxu0 }
  0xe6   : > { %v437_v42 = vadd.f32 %v436_v41, %v1428_v38  ;;  %v438_v43 = vpop.f32.mrb[2].mxu0 }
  0xe7   : > { %v439_v44 = vadd.f32 %v438_v43, %v1426_v37  ;;  %v440_v45 = vpop.f32.mrb[3].mxu0  ;;  %v513_v47 = vmax.f32 %v435_v40, 0.0 }
  0xe8   : > { %v441_v46 = vadd.f32 %v440_v45, %v1428_v38  ;;  %v514_v49 = vmax.f32 %v437_v42, 0.0 }
  0xe9   : > { %v515_v48 = vmax.f32 %v439_v44, 0.0 }
  0xea   : > { %v516_v50 = vmax.f32 %v441_v46, 0.0 }
  0xeb   : > { %v545_v51 = vpack.c.bf16 %v515_v48, %v513_v47 }
  0xec   : > { %v444_v52 = vpop.f32.mrb[4].mxu0  ;;  %v546_v53 = vpack.c.bf16 %v516_v50, %v514_v49 }
  0xed   : > { %v445_v54 = vadd.f32 %v444_v52, %v1426_v37  ;;  %v446_v55 = vpop.f32.mrb[5].mxu0 }
  0xee   : > { %v447_v56 = vadd.f32 %v446_v55, %v1428_v38  ;;  %v448_v57 = vpop.f32.mrb[6].mxu0  ;;  %728 = vmatprep.mubr.bf16.mxu1 %v546_v53 }
  0xef   : > { %v449_v58 = vadd.f32 %v448_v57, %v1426_v37  ;;  %v450_v59 = vpop.f32.mrb[7].mxu0  ;;  %729 = vmatmul.mubr.bf16.vlgmr.msra.gmra.mrb[0].mxu1 %v545_v51  ;;  %v517_v61 = vmax.f32 %v445_v54, 0.0 }
  0xf0   : > { %v451_v60 = vadd.f32 %v450_v59, %v1428_v38  ;;  %v518_v63 = vmax.f32 %v447_v56, 0.0 }
  0xf1   : > { %v519_v62 = vmax.f32 %v449_v58, 0.0 }
  0xf2   : > { %v520_v0 = vmax.f32 %v451_v60, 0.0 }
  0xf3   : > { %v547_v1 = vpack.c.bf16 %v519_v62, %v517_v61 }
  0xf4   : > { %v548_v2 = vpack.c.bf16 %v520_v0, %v518_v63  ;;  %v454_v3 = vpop.f32.mrb[8].mxu0 }
  0xf5   : > { %v455_v4 = vadd.f32 %v454_v3, %v1426_v37  ;;  %v456_v5 = vpop.f32.mrb[9].mxu0 }
  0xf6   : > { %v457_v6 = vadd.f32 %v456_v5, %v1428_v38  ;;  %v458_v7 = vpop.f32.mrb[10].mxu0  ;;  %736 = vmatprep.mubr.bf16.mxu1 %v548_v2 }
  0xf7   : > { %v459_v8 = vadd.f32 %v458_v7, %v1426_v37  ;;  %v460_v9 = vpop.f32.mrb[11].mxu0  ;;  %737 = vmatmul.mubr.bf16.gmra.mrb[4].mxu1 %v547_v1  ;;  %v521_v11 = vmax.f32 %v455_v4, 0.0 }
  0xf8   : > { %v461_v10 = vadd.f32 %v460_v9, %v1428_v38  ;;  %v522_v13 = vmax.f32 %v457_v6, 0.0 }
  0xf9   : > { %v523_v12 = vmax.f32 %v459_v8, 0.0 }
  0xfa   : > { %v524_v14 = vmax.f32 %v461_v10, 0.0 }
  0xfb   : > { %v549_v15 = vpack.c.bf16 %v523_v12, %v521_v11 }
  0xfc   : > { %v550_v16 = vpack.c.bf16 %v524_v14, %v522_v13  ;;  %v464_v17 = vpop.f32.mrb[12].mxu0 }
  0xfd   : > { %v465_v18 = vadd.f32 %v464_v17, %v1426_v37  ;;  %v466_v19 = vpop.f32.mrb[13].mxu0 }
  0xfe   : > { %v467_v20 = vadd.f32 %v466_v19, %v1428_v38  ;;  %v468_v21 = vpop.f32.mrb[14].mxu0  ;;  %744 = vmatprep.mubr.bf16.mxu1 %v550_v16 }
  0xff   : > { %v469_v22 = vadd.f32 %v468_v21, %v1426_v37  ;;  %v470_v23 = vpop.f32.mrb[15].mxu0  ;;  %745 = vmatmul.mubr.bf16.gmra.mrb[8].mxu1 %v549_v15  ;;  %v525_v25 = vmax.f32 %v465_v18, 0.0 }
 0x100   : > { %v471_v24 = vadd.f32 %v470_v23, %v1428_v38  ;;  %v526_v27 = vmax.f32 %v467_v20, 0.0 }
 0x101   : > { %v527_v26 = vmax.f32 %v469_v22, 0.0 }
 0x102   : > { %v528_v28 = vmax.f32 %v471_v24, 0.0 }
 0x103   : > { %v551_v29 = vpack.c.bf16 %v527_v26, %v525_v25  ;;  %v1268_v25 = vld [vmem:[%s1531_s5 + $0x18] sm:$0xff]   ;;  %v1271_v26 = vld [vmem:[%s1531_s5 + $0x30] sm:$0xff]  }
 0x104   : > { %v552_v30 = vpack.c.bf16 %v528_v28, %v526_v27  ;;  %v474_v31 = vpop.f32.mrb[16].mxu0  ;;  %1200 = vmatprep.subr.bf16.mxu0 %v1268_v25  ;;  %v1272_v27 = vld [vmem:[%s1531_s5 + $0x38] sm:$0xff]  }
 0x105   : > { %v475_v32 = vadd.f32 %v474_v31, %v1426_v37  ;;  %v476_v33 = vpop.f32.mrb[17].mxu0  ;;  %1201 = vmatpush3.bf16.msra.mxu0 %v1268_v25 }
 0x106   : > { %v477_v34 = vadd.f32 %v476_v33, %v1428_v38  ;;  %v478_v35 = vpop.f32.mrb[18].mxu0  ;;  %752 = vmatprep.mubr.bf16.mxu1 %v552_v30 }
 0x107   : > { %v479_v36 = vadd.f32 %v478_v35, %v1426_v37  ;;  %v480_v39 = vpop.f32.mrb[19].mxu0  ;;  %753 = vmatmul.mubr.bf16.gmra.mrb[12].mxu1 %v551_v29  ;;  %v529_v41 = vmax.f32 %v475_v32, 0.0  ;;  %v1480_v29 = vld [vmem:[%s1530_s4] ss:$0 sm:$0xff] }
 0x108   : > { %v481_v40 = vadd.f32 %v480_v39, %v1428_v38  ;;  %v530_v43 = vmax.f32 %v477_v34, 0.0 }
 0x109   : > { %v531_v42 = vmax.f32 %v479_v36, 0.0 }
 0x10a   : > { %v532_v44 = vmax.f32 %v481_v40, 0.0 }
 0x10b   : > { %v553_v45 = vpack.c.bf16 %v531_v42, %v529_v41 }
 0x10c   : > { %v554_v46 = vpack.c.bf16 %v532_v44, %v530_v43  ;;  %v484_v47 = vpop.f32.mrb[20].mxu0 }
 0x10d   : > { %v485_v48 = vadd.f32 %v484_v47, %v1426_v37  ;;  %v486_v49 = vpop.f32.mrb[21].mxu0 }
 0x10e   : > { %v487_v50 = vadd.f32 %v486_v49, %v1428_v38  ;;  %v488_v51 = vpop.f32.mrb[22].mxu0  ;;  %760 = vmatprep.mubr.bf16.mxu1 %v554_v46 }
 0x10f   : > { %v489_v52 = vadd.f32 %v488_v51, %v1426_v37  ;;  %v490_v53 = vpop.f32.mrb[23].mxu0  ;;  %761 = vmatmul.mubr.bf16.gmra.mrb[16].mxu1 %v553_v45  ;;  %v533_v55 = vmax.f32 %v485_v48, 0.0 }
 0x110   : > { %v491_v54 = vadd.f32 %v490_v53, %v1428_v38  ;;  %v534_v57 = vmax.f32 %v487_v50, 0.0 }
 0x111   : > { %v535_v56 = vmax.f32 %v489_v52, 0.0 }
 0x112   : > { %v536_v58 = vmax.f32 %v491_v54, 0.0 }
 0x113   : > { %v555_v59 = vpack.c.bf16 %v535_v56, %v533_v55 }
 0x114   : > { %v556_v60 = vpack.c.bf16 %v536_v58, %v534_v57  ;;  %v494_v61 = vpop.f32.mrb[24].mxu0 }
 0x115   : > { %v495_v62 = vadd.f32 %v494_v61, %v1426_v37  ;;  %v496_v63 = vpop.f32.mrb[25].mxu0 }
 0x116   : > { %v497_v0 = vadd.f32 %v496_v63, %v1428_v38  ;;  %v498_v1 = vpop.f32.mrb[26].mxu0  ;;  %768 = vmatprep.mubr.bf16.mxu1 %v556_v60 }
 0x117   : > { %v499_v2 = vadd.f32 %v498_v1, %v1426_v37  ;;  %v500_v3 = vpop.f32.mrb[27].mxu0  ;;  %769 = vmatmul.mubr.bf16.gmra.mrb[20].mxu1 %v555_v59  ;;  %v537_v5 = vmax.f32 %v495_v62, 0.0 }
 0x118   : > { %v501_v4 = vadd.f32 %v500_v3, %v1428_v38  ;;  %v538_v7 = vmax.f32 %v497_v0, 0.0 }
 0x119   : > { %v539_v6 = vmax.f32 %v499_v2, 0.0 }
 0x11a   : > { %v540_v8 = vmax.f32 %v501_v4, 0.0 }
 0x11b   : > { %v557_v9 = vpack.c.bf16 %v539_v6, %v537_v5 }
 0x11c   : > { %v558_v10 = vpack.c.bf16 %v540_v8, %v538_v7  ;;  %v504_v11 = vpop.f32.mrb[28].mxu0 }
 0x11d   : > { %v505_v12 = vadd.f32 %v504_v11, %v1426_v37  ;;  %v506_v13 = vpop.f32.mrb[29].mxu0 }
 0x11e   : > { %v507_v14 = vadd.f32 %v506_v13, %v1428_v38  ;;  %v508_v15 = vpop.f32.mrb[30].mxu0  ;;  %776 = vmatprep.mubr.bf16.mxu1 %v558_v10 }
 0x11f   : > { %v509_v16 = vadd.f32 %v508_v15, %v1426_v37  ;;  %v510_v17 = vpop.f32.mrb[31].mxu0  ;;  %777 = vmatmul.mubr.bf16.gmra.mrb[24].mxu1 %v557_v9  ;;  %v541_v19 = vmax.f32 %v505_v12, 0.0  ;;  %v1269_v37 = vld [vmem:[%s1531_s5 + $0x20] sm:$0xff]  }
 0x120   : > { %v511_v18 = vadd.f32 %v510_v17, %v1428_v38  ;;  %v542_v21 = vmax.f32 %v507_v14, 0.0  ;;  %1202 = vmatprep.subr.bf16.mxu0 %v1269_v37  ;;  %v1270_v38 = vld [vmem:[%s1531_s5 + $0x28] sm:$0xff]  }
 0x121   : > { %v543_v20 = vmax.f32 %v509_v16, 0.0  ;;  %1203 = vmatpush3.bf16.msra.mxu0 %v1269_v37 }
 0x122   : > { %v544_v22 = vmax.f32 %v511_v18, 0.0  ;;  %1204 = vmatprep.subr.bf16.mxu0 %v1270_v38 }
 0x123   : > { %v559_v23 = vpack.c.bf16 %v543_v20, %v541_v19 }
 0x124   : > { %v560_v24 = vpack.c.bf16 %v544_v22, %v542_v21 }
 0x125   : > { %1205 = vmatpush3.bf16.msra.mxu0 %v1270_v38 }
 0x126   : > { %784 = vmatprep.mubr.bf16.mxu1 %v560_v24  ;;  %1206 = vmatprep.subr.bf16.mxu0 %v1271_v26 }
 0x127   : > { %785 = vmatmul.mubr.bf16.gmra.mrb[28].mxu1 %v559_v23 }
 0x129   : > { %1207 = vmatpush3.bf16.msra.mxu0 %v1271_v26 }
 0x12a   : > { %1208 = vmatprep.subr.bf16.mxu0 %v1272_v27 }
 0x12d   : > { %1209 = vmatpush3.bf16.msra.mxu0 %v1272_v27 }
 0x1c2   : > { %v1130_v28 = vpop.f32.mrb[0].mxu1 }
 0x1c3   : > { %v1131_v30 = vpop.f32.mrb[1].mxu1 }
 0x1c4   : > { %v1132_v31 = vadd.f32 %v1131_v30, %v1130_v28  ;;  %v1133_v32 = vpop.f32.mrb[2].mxu1 }
 0x1c5   : > { %v1134_v33 = vpop.f32.mrb[3].mxu1 }
 0x1c6   : > { %v731_v34 = vadd.f32 %v1132_v31, %v1480_v29  ;;  %v1135_v35 = vadd.f32 %v1134_v33, %v1133_v32 }
 0x1c8   : > { %v734_v36 = vadd.f32 %v1135_v35, %v1480_v29  ;;  %v793_v39 = vmax.f32 %v731_v34, 0.0 }
 0x1ca   : > { %v794_v40 = vmax.f32 %v734_v36, 0.0  ;;  %v1136_v41 = vpop.f32.mrb[4].mxu1 }
 0x1cb   : > { %v1137_v42 = vpop.f32.mrb[5].mxu1 }
 0x1cc   : > { %v1138_v43 = vadd.f32 %v1137_v42, %v1136_v41  ;;  %v1139_v44 = vpop.f32.mrb[6].mxu1  ;;  %v809_v45 = vpack.c.bf16 %v794_v40, %v793_v39 }
 0x1cd   : > { %v1140_v46 = vpop.f32.mrb[7].mxu1 }
 0x1ce   : > { %v739_v47 = vadd.f32 %v1138_v43, %v1480_v29  ;;  %v1141_v48 = vadd.f32 %v1140_v46, %v1139_v44  ;;  %1210 = vmatprep.mubr.bf16.mxu0 %v809_v45 }
 0x1d0   : > { %v742_v49 = vadd.f32 %v1141_v48, %v1480_v29  ;;  %v795_v50 = vmax.f32 %v739_v47, 0.0 }
 0x1d2   : > { %v796_v51 = vmax.f32 %v742_v49, 0.0  ;;  %v1142_v52 = vpop.f32.mrb[8].mxu1 }
 0x1d3   : > { %v1143_v53 = vpop.f32.mrb[9].mxu1 }
 0x1d4   : > { %v810_v54 = vpack.c.bf16 %v796_v51, %v795_v50  ;;  %v1144_v55 = vadd.f32 %v1143_v53, %v1142_v52  ;;  %v1145_v56 = vpop.f32.mrb[10].mxu1 }
 0x1d5   : > { %v1146_v57 = vpop.f32.mrb[11].mxu1 }
 0x1d6   : > { %v747_v58 = vadd.f32 %v1144_v55, %v1480_v29  ;;  %v1147_v59 = vadd.f32 %v1146_v57, %v1145_v56  ;;  %1211 = vmatmul.mubr.bf16.vlgmr.msra.gmra.mrb[32].mxu0 %v810_v54  ;;  %v1103_v56 = vld [vmem:[%s1532_s6] ss:$0 sm:$0xff] }
 0x1d8   : > { %v750_v60 = vadd.f32 %v1147_v59, %v1480_v29  ;;  %v797_v61 = vmax.f32 %v747_v58, 0.0 }
 0x1da   : > { %v798_v62 = vmax.f32 %v750_v60, 0.0  ;;  %v1148_v63 = vpop.f32.mrb[12].mxu1 }
 0x1db   : > { %v1149_v0 = vpop.f32.mrb[13].mxu1 }
 0x1dc   : > { %v1150_v1 = vadd.f32 %v1149_v0, %v1148_v63  ;;  %v1151_v2 = vpop.f32.mrb[14].mxu1  ;;  %v811_v3 = vpack.c.bf16 %v798_v62, %v797_v61 }
 0x1dd   : > { %v1152_v4 = vpop.f32.mrb[15].mxu1 }
 0x1de   : > { %v755_v5 = vadd.f32 %v1150_v1, %v1480_v29  ;;  %v1153_v6 = vadd.f32 %v1152_v4, %v1151_v2  ;;  %1214 = vmatprep.mubr.bf16.mxu0 %v811_v3 }
 0x1e0   : > { %v758_v7 = vadd.f32 %v1153_v6, %v1480_v29  ;;  %v799_v8 = vmax.f32 %v755_v5, 0.0 }
 0x1e2   : > { %v800_v9 = vmax.f32 %v758_v7, 0.0  ;;  %v1154_v10 = vpop.f32.mrb[16].mxu1 }
 0x1e3   : > { %v1155_v11 = vpop.f32.mrb[17].mxu1 }
 0x1e4   : > { %v1156_v12 = vadd.f32 %v1155_v11, %v1154_v10  ;;  %v1157_v13 = vpop.f32.mrb[18].mxu1  ;;  %v812_v14 = vpack.c.bf16 %v800_v9, %v799_v8 }
 0x1e5   : > { %v1158_v15 = vpop.f32.mrb[19].mxu1 }
 0x1e6   : > { %v763_v16 = vadd.f32 %v1156_v12, %v1480_v29  ;;  %v1159_v17 = vadd.f32 %v1158_v15, %v1157_v13  ;;  %1215 = vmatmul.mubr.bf16.gmra.mrb[36].mxu0 %v812_v14 }
 0x1e8   : > { %v766_v18 = vadd.f32 %v1159_v17, %v1480_v29  ;;  %v801_v19 = vmax.f32 %v763_v16, 0.0 }
 0x1ea   : > { %v802_v20 = vmax.f32 %v766_v18, 0.0  ;;  %v1160_v21 = vpop.f32.mrb[20].mxu1 }
 0x1eb   : > { %v1161_v22 = vpop.f32.mrb[21].mxu1 }
 0x1ec   : > { %v1162_v23 = vadd.f32 %v1161_v22, %v1160_v21  ;;  %v1163_v24 = vpop.f32.mrb[22].mxu1  ;;  %v813_v25 = vpack.c.bf16 %v802_v20, %v801_v19 }
 0x1ed   : > { %v1164_v37 = vpop.f32.mrb[23].mxu1 }
 0x1ee   : > { %v771_v38 = vadd.f32 %v1162_v23, %v1480_v29  ;;  %v1165_v26 = vadd.f32 %v1164_v37, %v1163_v24  ;;  %1218 = vmatprep.mubr.bf16.mxu0 %v813_v25 }
 0x1f0   : > { %v774_v27 = vadd.f32 %v1165_v26, %v1480_v29  ;;  %v803_v28 = vmax.f32 %v771_v38, 0.0 }
 0x1f2   : > { %v804_v30 = vmax.f32 %v774_v27, 0.0  ;;  %v1166_v31 = vpop.f32.mrb[24].mxu1 }
 0x1f3   : > { %v1167_v32 = vpop.f32.mrb[25].mxu1 }
 0x1f4   : > { %v1168_v33 = vadd.f32 %v1167_v32, %v1166_v31  ;;  %v1169_v34 = vpop.f32.mrb[26].mxu1  ;;  %v814_v35 = vpack.c.bf16 %v804_v30, %v803_v28 }
 0x1f5   : > { %v1170_v36 = vpop.f32.mrb[27].mxu1 }
 0x1f6   : > { %v779_v39 = vadd.f32 %v1168_v33, %v1480_v29  ;;  %v1171_v40 = vadd.f32 %v1170_v36, %v1169_v34  ;;  %1219 = vmatmul.mubr.bf16.gmra.mrb[40].mxu0 %v814_v35 }
 0x1f8   : > { %v782_v41 = vadd.f32 %v1171_v40, %v1480_v29  ;;  %v805_v42 = vmax.f32 %v779_v39, 0.0 }
 0x1fa   : > { %v806_v43 = vmax.f32 %v782_v41, 0.0  ;;  %v1172_v44 = vpop.f32.mrb[28].mxu1 }
 0x1fb   : > { %v1173_v45 = vpop.f32.mrb[29].mxu1 }
 0x1fc   : > { %v1174_v46 = vadd.f32 %v1173_v45, %v1172_v44  ;;  %v1175_v47 = vpop.f32.mrb[30].mxu1  ;;  %v815_v48 = vpack.c.bf16 %v806_v43, %v805_v42 }
 0x1fd   : > { %v1176_v49 = vpop.f32.mrb[31].mxu1 }
 0x1fe   : > { %v787_v50 = vadd.f32 %v1174_v46, %v1480_v29  ;;  %v1177_v51 = vadd.f32 %v1176_v49, %v1175_v47  ;;  %1222 = vmatprep.mubr.bf16.mxu0 %v815_v48 }
 0x200   : > { %v790_v52 = vadd.f32 %v1177_v51, %v1480_v29  ;;  %v807_v53 = vmax.f32 %v787_v50, 0.0 }
 0x202   : > { %v808_v54 = vmax.f32 %v790_v52, 0.0 }
 0x204   : > { %v816_v55 = vpack.c.bf16 %v808_v54, %v807_v53 }
 0x206   : > { %1223 = vmatmul.mubr.bf16.gmra.mrb[44].mxu0 %v816_v55 }
 0x2a9   : > { %v1212_v57 = vpop.f32.mrb[32].mxu0 }
 0x2aa   : > { %v931_v29 = vadd.f32 %v1212_v57, %v1103_v56  ;;  %v922_v58 = vpop.f32.mrb[33].mxu0 }
 0x2ab   : > { %v923_v59 = vadd.f32 %v1103_v56, %v922_v58  ;;  %v1213_v60 = vpop.f32.mrb[34].mxu0 }
 0x2ac   : > { %987 = vst [vmem:[%s1505_s10 + $0x10] sm:$0xff] %v931_v29  ;;  %v934_v61 = vadd.f32 %v1213_v60, %v1103_v56  ;;  %v925_v62 = vpop.f32.mrb[35].mxu0 }
 0x2ad   : > { %985 = vst [vmem:[%s1505_s10] sm:$0xff] %v923_v59  ;;  %v926_v63 = vadd.f32 %v1103_v56, %v925_v62 }
 0x2ae   : > { %988 = vst [vmem:[%s1505_s10 + $0x18] sm:$0xff] %v934_v61 }
 0x2af   : > { %986 = vst [vmem:[%s1505_s10 + $0x8] sm:$0xff] %v926_v63 }
 0x2b9   : > { %v1216_v0 = vpop.f32.mrb[36].mxu0 }
 0x2ba   : > { %v947_v1 = vadd.f32 %v1216_v0, %v1103_v56  ;;  %v938_v2 = vpop.f32.mrb[37].mxu0 }
 0x2bb   : > { %v939_v3 = vadd.f32 %v1103_v56, %v938_v2  ;;  %v1217_v4 = vpop.f32.mrb[38].mxu0 }
 0x2bc   : > { %991 = vst [vmem:[%s1505_s10 + $0x30] sm:$0xff] %v947_v1  ;;  %v950_v5 = vadd.f32 %v1217_v4, %v1103_v56  ;;  %v941_v6 = vpop.f32.mrb[39].mxu0 }
 0x2bd   : > { %989 = vst [vmem:[%s1505_s10 + $0x20] sm:$0xff] %v939_v3  ;;  %v942_v7 = vadd.f32 %v1103_v56, %v941_v6 }
 0x2be   : > { %992 = vst [vmem:[%s1505_s10 + $0x38] sm:$0xff] %v950_v5 }
 0x2bf   : > { %990 = vst [vmem:[%s1505_s10 + $0x28] sm:$0xff] %v942_v7 }
 0x2c9   : > { %v1220_v8 = vpop.f32.mrb[40].mxu0 }
 0x2ca   : > { %v963_v9 = vadd.f32 %v1220_v8, %v1103_v56  ;;  %v954_v10 = vpop.f32.mrb[41].mxu0 }
 0x2cb   : > { %v955_v11 = vadd.f32 %v1103_v56, %v954_v10  ;;  %v1221_v12 = vpop.f32.mrb[42].mxu0 }
 0x2cc   : > { %995 = vst [vmem:[%s1505_s10 + $0x50] sm:$0xff] %v963_v9  ;;  %v966_v13 = vadd.f32 %v1221_v12, %v1103_v56  ;;  %v957_v14 = vpop.f32.mrb[43].mxu0 }
 0x2cd   : > { %993 = vst [vmem:[%s1505_s10 + $0x40] sm:$0xff] %v955_v11  ;;  %v958_v15 = vadd.f32 %v1103_v56, %v957_v14 }
 0x2ce   : > { %996 = vst [vmem:[%s1505_s10 + $0x58] sm:$0xff] %v966_v13 }
 0x2cf   : > { %994 = vst [vmem:[%s1505_s10 + $0x48] sm:$0xff] %v958_v15 }
 0x2d9   : > { %v1224_v16 = vpop.f32.mrb[44].mxu0 }
 0x2da   : > { %v979_v17 = vadd.f32 %v1224_v16, %v1103_v56  ;;  %v970_v18 = vpop.f32.mrb[45].mxu0 }
 0x2db   : > { %v971_v19 = vadd.f32 %v1103_v56, %v970_v18  ;;  %v1225_v20 = vpop.f32.mrb[46].mxu0 }
 0x2dc   : > { %999 = vst [vmem:[%s1505_s10 + $0x70] sm:$0xff] %v979_v17  ;;  %v982_v21 = vadd.f32 %v1225_v20, %v1103_v56  ;;  %v973_v22 = vpop.f32.mrb[47].mxu0 }
 0x2dd   : > { %997 = vst [vmem:[%s1505_s10 + $0x60] sm:$0xff] %v971_v19  ;;  %v974_v23 = vadd.f32 %v1103_v56, %v973_v22 }
 0x2de   : > { %1000 = vst [vmem:[%s1505_s10 + $0x78] sm:$0xff] %v982_v21 }
 0x2df   : > { %998 = vst [vmem:[%s1505_s10 + $0x68] sm:$0xff] %v974_v23 }
 0x2e0 PF: > { %s17_s24 = sadd.s32 1, %s1279_s24  }
 0x2e1   : > { %p14_p4 = scmp.ge.s32.totalorder %s17_s24, 6  }
 0x2e3   :  { %16 = sbr.rel (!%p14_p4) target bundleno = 1 (0x1), region = 78 }

</bundles_post_ra>
